<compile_context>
chip_gen: v5e
topology: v5e:2x2
jax: 0.10.0
libtpu: 0.0.40
codegen_flags: <defaults>
</compile_context>

<pallas_src>
import functools

import numpy as np

import jax
import jax.numpy as jnp
from jax import lax
from jax.experimental import pallas as pl
from jax.experimental.pallas import tpu as pltpu


# ----------------------------------------------------------------------------
# Host-side (trace-time) helpers
# ----------------------------------------------------------------------------

def _pair(v):
    if isinstance(v, (tuple, list)):
        return int(v[0]), int(v[1])
    return int(v), int(v)


def _resolve_resize_size(resize_size, H, W):
    """kornia Resize: int -> short side = resize_size, aspect preserved."""
    if isinstance(resize_size, (tuple, list)):
        return int(resize_size[0]), int(resize_size[1])
    s = int(resize_size)
    aspect = W / H
    if aspect >= 1.0:                 # W >= H: short side is H
        return s, int(s * aspect)
    return int(s / aspect), s         # W <  H: short side is W


def _round_down(x, m):
    return (x // m) * m


def _round_up(x, m):
    return -(-x // m) * m


def _interp_crop_matrix(in_size, resize_size, crop_size):
    """Bilinear (align_corners=True) interpolation matrix restricted to the
    cropped output coordinates.  Shape (crop_size, in_size), float64."""
    top = (resize_size - crop_size) // 2
    out_idx = np.arange(crop_size, dtype=np.float64) + float(top)
    if resize_size == 1:
        src = np.zeros_like(out_idx)
    else:
        src = out_idx * (float(in_size - 1) / float(resize_size - 1))
    src = np.clip(src, 0.0, float(in_size - 1))
    lo = np.clip(np.floor(src).astype(np.int64), 0, in_size - 1)
    hi = np.clip(lo + 1, 0, in_size - 1)
    frac = src - lo.astype(np.float64)

    mat = np.zeros((crop_size, in_size), dtype=np.float64)
    rows = np.arange(crop_size)
    np.add.at(mat, (rows, lo), 1.0 - frac)
    np.add.at(mat, (rows, hi), frac)
    return mat


def _trim_support(mat, in_size, tile):
    """Trim to the tile-aligned contiguous column band carrying nonzero
    weight.  Lossless (only exact-zero columns are removed).  Returns
    (mat_band, band_start)."""
    nz = np.nonzero(np.any(mat != 0.0, axis=0))[0]
    if nz.size == 0:
        return mat, 0
    start = _round_down(int(nz[0]), tile)
    end = min(_round_up(int(nz[-1]) + 1, tile), in_size)
    if end - start >= in_size:
        return mat, 0
    return mat[:, start:end], start


def _tpu_vmem_capacity():
    """Per-TensorCore VMEM bytes (generation-aware), conservative fallback."""
    try:
        info = pltpu.get_tpu_info()
        cap = int(getattr(info, "vmem_capacity_bytes", 0))
        if cap > 0:
            return cap
    except Exception:
        pass
    return 64 * 2 ** 20   # v7x per-core size; safe everywhere


def _mxu_m_target():
    """MXU M-fill target per generation (v5e: 128-wide MXU -> 256 rows)."""
    try:
        kind = jax.devices()[0].device_kind.lower()
        if "v5 lite" in kind or "v5e" in kind or "v5lite" in kind:
            return 256
    except Exception:
        pass
    return 512


def _choose_block_batch(NC, step_bytes_fn, batched_m_fn, budget, mxu_m,
                        amortize_bytes=12 * 2 ** 20):
    """Largest divisor of NC fitting the VMEM budget; early-stop once the
    per-step block already amortizes pipeline overhead AND the batched matmul
    M dim hits the per-generation MXU target."""
    cap = NC if NC < 2 else NC // 2   # keep grid >= 2 so both v7x TCs get work
    best = 1
    for bc in range(1, NC + 1):
        if NC % bc != 0 or bc > cap:
            continue
        if step_bytes_fn(bc) > budget:
            break
        best = bc
        if step_bytes_fn(bc) >= amortize_bytes and batched_m_fn(bc) >= mxu_m:
            break
    return best


# ----------------------------------------------------------------------------
# Kernel builders
# ----------------------------------------------------------------------------

def _make_kernel(Bc, H, W, Ch, Cw, rows_first, r0, Hb, c0, Wb, use_scratch):
    no_trim = (r0 == 0 and Hb == H and c0 == 0 and Wb == W)
    unrolled = Bc <= 4

    def to_bf16(v):
        # u8 -> f32 -> bf16 (portable lowering on all gens); exact for 0..255.
        if v.dtype == jnp.uint8:
            v = v.astype(jnp.float32)
        return v.astype(jnp.bfloat16)

    def load_plane(x_ref, b):
        if no_trim:
            return to_bf16(x_ref[b])
        # Tile-aligned static window (support-trimmed band).
        return to_bf16(x_ref[b, r0:r0 + Hb, c0:c0 + Wb])

    def plane_loop(body):
        # Static unroll for small Bc (LLO scheduling); rolled fori_loop for
        # larger Bc so per-plane intermediates don't stay live simultaneously.
        if unrolled:
            for b in range(Bc):
                body(b)
        else:
            def wrapped(b, carry):
                body(b)
                return carry
            lax.fori_loop(0, Bc, wrapped, 0)

    if rows_first and use_scratch:
        # Pass 1: per-plane row resize -> bf16 VMEM scratch (plane stride Ch,
        #         8-aligned since Ch % 8 == 0).
        # Pass 2: ONE batched column matmul (Bc*Ch, Wb) @ (Wb, Cw) written
        #         DIRECTLY into o_ref (free relayout: Ch % 8 == 0).
        def kernel(x_ref, wr_ref, wct_ref, o_ref, tmp_ref):
            wr = wr_ref[...]
            wct = wct_ref[...]

            def pass1(b):
                xb = load_plane(x_ref, b)
                row = jnp.dot(wr, xb, preferred_element_type=jnp.float32)
                row = row.astype(jnp.bfloat16)
                if isinstance(b, int):
                    tmp_ref[b * Ch:(b + 1) * Ch, :] = row
                else:
                    start = pl.multiple_of(b * Ch, 8)
                    tmp_ref[pl.ds(start, Ch), :] = row

            plane_loop(pass1)
            o_ref[...] = jnp.dot(
                tmp_ref[...], wct, preferred_element_type=jnp.float32
            ).reshape(Bc, Ch, Cw)

        return kernel, [pltpu.VMEM((Bc * Ch, Wb), jnp.bfloat16)]

    # Fully per-plane path (no scratch): bounded per-plane intermediates,
    # each result written straight into o_ref[b].
    def kernel(x_ref, wr_ref, wct_ref, o_ref):
        wr = wr_ref[...]
        wct = wct_ref[...]

        def body(b):
            xb = load_plane(x_ref, b)
            if rows_first:
                t = jnp.dot(wr, xb, preferred_element_type=jnp.float32)
                t = t.astype(jnp.bfloat16)
                o_ref[b] = jnp.dot(t, wct, preferred_element_type=jnp.float32)
            else:
                t = jnp.dot(xb, wct, preferred_element_type=jnp.float32)
                t = t.astype(jnp.bfloat16)
                o_ref[b] = jnp.dot(wr, t, preferred_element_type=jnp.float32)

        plane_loop(body)

    return kernel, []


# ----------------------------------------------------------------------------
# Public entry point
# ----------------------------------------------------------------------------

@functools.partial(jax.jit, static_argnames=("resize_size", "crop_size"))
def resize_center_crop(x, *, resize_size, crop_size):
    """Pallas implementation of ResizeCenterCrop.forward for NCHW input."""
    N, C, H, W = x.shape
    Rh, Rw = _resolve_resize_size(resize_size, H, W)
    Ch, Cw = _pair(crop_size)

    # uint8 stays uint8 in HBM (cast fused into the kernel); other non-f32
    # dtypes cast up front (matches module semantics: output is float).
    if x.dtype != jnp.uint8 and x.dtype != jnp.float32:
        x = x.astype(jnp.float32)
    in_itemsize = x.dtype.itemsize

    # Separable interpolation matrices restricted to the cropped rows/cols,
    # support-trimmed to the tile-aligned input band they actually touch.
    wr_full = _interp_crop_matrix(H, Rh, Ch)            # (Ch, H)   f64
    wc_full = _interp_crop_matrix(W, Rw, Cw)            # (Cw, W)   f64
    wr_band, r0 = _trim_support(wr_full, H, 32)         # rows: sublane axis
    wc_band, c0 = _trim_support(wc_full, W, 128)        # cols: lane axis
    Hb = wr_band.shape[1]
    Wb = wc_band.shape[1]

    # bf16 weights: DEFAULT MXU precision truncates operands to bf16 anyway;
    # bf16 here additionally halves VMEM / vreg traffic.
    wr = jnp.asarray(wr_band.astype(np.float32), dtype=jnp.bfloat16)          # (Ch, Hb)
    wct = jnp.asarray(wc_band.T.copy().astype(np.float32), dtype=jnp.bfloat16)  # (Wb, Cw)

    NC = N * C
    xb = x.reshape(NC, H, W)

    # Matmul order chosen at trace time by per-plane FLOP count.
    rows_first = Ch * Wb * (Hb + Cw) < Hb * Cw * (Wb + Ch)
    use_scratch = rows_first and (Ch % 8 == 0)

    # Generation-aware VMEM sizing.
    vmem_cap = _tpu_vmem_capacity()
    step_budget = int(0.38 * vmem_cap)     # ~48 MiB v5e/v6e, ~24 MiB v7x
    vmem_limit_cap = int(0.75 * vmem_cap)  # ~96 MiB v5e/v6e, ~48 MiB v7x
    mxu_m = _mxu_m_target()

    def step_bytes(bc):
        b_in = 2 * bc * H * W * in_itemsize          # double-buffered input
        b_out = 2 * bc * Ch * Cw * 4                 # double-buffered f32 out
        b_scr = bc * Ch * Wb * 2 if use_scratch else 0   # bf16 tmp scratch
        b_wrk = (Hb * Wb + Ch * Wb + Hb * Cw) * 2    # per-plane bf16 transients
        b_wrk += (bc if use_scratch else 1) * Ch * Cw * 4
        return b_in + b_out + b_scr + b_wrk

    def batched_m(bc):
        # Batched second matmul M (rows-first scratch path); per-plane paths
        # don't grow M with bc, so only the amortization threshold applies.
        return bc * Ch if use_scratch else (1 << 30)

    Bc = _choose_block_batch(NC, step_bytes, batched_m, step_budget, mxu_m)
    # TODO(synk): for frames where even Bc=1 exceeds the step budget (e.g. 4K
    # f32 planes on v7x's 64 MiB VMEM) an extra "arbitrary" H-strip grid axis
    # with a (Bc, Ch, Cw) accumulator would be needed to keep VMEM bounded.

    kernel, scratch_shapes = _make_kernel(
        Bc, H, W, Ch, Cw, rows_first, r0, Hb, c0, Wb, use_scratch)

    weight_bytes = (Ch * Hb + Wb * Cw) * 2 * 2
    needed = step_bytes(Bc) + weight_bytes
    vmem_limit = int(min(vmem_limit_cap,
                         max(32 * 2 ** 20, needed + 12 * 2 ** 20)))

    flops_per_plane = (2 * Ch * Hb * Wb + 2 * Ch * Wb * Cw) if rows_first \
        else (2 * Hb * Wb * Cw + 2 * Ch * Hb * Cw)
    cost = pl.CostEstimate(
        flops=int(NC * flops_per_plane),
        transcendentals=0,
        bytes_accessed=int(NC * (H * W * in_itemsize + Ch * Cw * 4)
                           + (Ch * Hb + Wb * Cw) * 2),
    )

    # NOTE: matmuls use DEFAULT MXU precision (bf16 operand passes); results
    # differ from PyTorch f32 bilinear by ~1e-3 relative.
    # TODO(synk): kornia CenterCrop (crop_by_boxes) places the crop at a
    # half-pixel offset when (Rh - Ch) or (Rw - Cw) is odd; the integer-offset
    # crop here diverges in that case.  If crop_size exceeds the resized size,
    # the out-of-range rows clamp to the border instead of padding/erroring.
    out = pl.pallas_call(
        kernel,
        out_shape=jax.ShapeDtypeStruct((NC, Ch, Cw), jnp.float32),
        grid=(NC // Bc,),
        in_specs=[
            pl.BlockSpec((Bc, H, W), lambda b: (b, 0, 0)),
            pl.BlockSpec((Ch, Hb), lambda b: (0, 0)),
            pl.BlockSpec((Wb, Cw), lambda b: (0, 0)),
        ],
        out_specs=pl.BlockSpec((Bc, Ch, Cw), lambda b: (b, 0, 0)),
        scratch_shapes=scratch_shapes,
        compiler_params=pltpu.CompilerParams(
            dimension_semantics=("parallel",),
            vmem_limit_bytes=vmem_limit,
        ),
        cost_estimate=cost,
    )(xb, wr, wct)

    return out.reshape(N, C, Ch, Cw)


if __name__ == "__main__":
    key = jax.random.PRNGKey(0)
    N, C, H, W = 2, 4, 16, 16
    x = jax.random.uniform(key, (N, C, H, W), dtype=jnp.float32) * 255.0
    x_u8 = x.astype(jnp.uint8)          # exercise the fused uint8 cast path

    resize_size = 12                     # short-side resize -> (12, 12)
    crop_size = 8                        # center crop -> (8, 8)

    y = resize_center_crop(x_u8, resize_size=resize_size, crop_size=crop_size)
    y = jax.block_until_ready(y)

    assert y.shape == (N, C, 8, 8), y.shape
    assert y.dtype == jnp.float32, y.dtype
    assert bool(jnp.all(jnp.isfinite(y)))

    # Also run the float32 input path once.
    y_f = jax.block_until_ready(
        resize_center_crop(x, resize_size=resize_size, crop_size=crop_size))
    assert y_f.shape == (N, C, 8, 8)
    assert bool(jnp.all(jnp.isfinite(y_f)))

    # Numerical reference (host, float64) using the same separable weights.
    Rh, Rw = _resolve_resize_size(resize_size, H, W)
    wr_np = _interp_crop_matrix(H, Rh, 8)   # (8, H) f64
    wc_np = _interp_crop_matrix(W, Rw, 8)   # (8, W) f64
    x_np = np.asarray(x_u8).astype(np.float64)
    ref = np.einsum("ih,nchw,jw->ncij", wr_np, x_np, wc_np)
    np.testing.assert_allclose(np.asarray(y), ref, rtol=5e-2, atol=2.0)

    print("KERNEL_OK")
</pallas_src>

<mosaic_0001>
module attributes {stable_mosaic.version = 11 : i64} {
  func.func @kernel(%arg0: i32, %arg1: memref<4x16x16xi8, #tpu.memory_space<vmem>>, %arg2: memref<8x16xbf16, #tpu.memory_space<vmem>>, %arg3: memref<16x8xbf16, #tpu.memory_space<vmem>>, %arg4: memref<4x8x8xf32, #tpu.memory_space<vmem>>) attributes {dimension_semantics = [#tpu.dimension_semantics<parallel>], iteration_bounds = array<i64: 2>, scalar_prefetch = 0 : i64, scratch_operands = 0 : i64, tpu.core_type = #tpu.core_type<tc>, window_params = [{transform_indices = @transform_0, window_bounds = array<i64: 4, 16, 16>}, {pipeline_mode = #tpu.pipeline_mode<synchronous>, transform_indices = @transform_1, window_bounds = array<i64: 8, 16>}, {pipeline_mode = #tpu.pipeline_mode<synchronous>, transform_indices = @transform_2, window_bounds = array<i64: 16, 8>}, {transform_indices = @transform_3, window_bounds = array<i64: 4, 8, 8>}]} {
    %c0 = arith.constant 0 : index
    %c0_0 = arith.constant 0 : index
    %0 = vector.load %arg2[%c0, %c0_0] : memref<8x16xbf16, #tpu.memory_space<vmem>>, vector<8x16xbf16>
    %c0_1 = arith.constant 0 : index
    %c0_2 = arith.constant 0 : index
    %1 = vector.load %arg3[%c0_1, %c0_2] : memref<16x8xbf16, #tpu.memory_space<vmem>>, vector<16x8xbf16>
    %c0_3 = arith.constant 0 : index
    %c0_4 = arith.constant 0 : index
    %c0_5 = arith.constant 0 : index
    %2 = vector.load %arg1[%c0_3, %c0_4, %c0_5] : memref<4x16x16xi8, #tpu.memory_space<vmem>>, vector<1x16x16xi8>
    %3 = vector.shape_cast %2 : vector<1x16x16xi8> to vector<16x16xi8>
    %4 = arith.uitofp %3 : vector<16x16xi8> to vector<16x16xf32>
    %5 = arith.truncf %4 : vector<16x16xf32> to vector<16x16xbf16>
    %cst = arith.constant dense<0.000000e+00> : vector<16x8xf32>
    %6 = tpu.matmul %5, %1, %cst {dimension_numbers = #tpu.dot_dimension_numbers<[1], [0], [0], [1], [0, 0, 1, 1], [], []>} : vector<16x16xbf16>, vector<16x8xbf16>, vector<16x8xf32> -> vector<16x8xf32>
    %7 = arith.truncf %6 : vector<16x8xf32> to vector<16x8xbf16>
    %cst_6 = arith.constant dense<0.000000e+00> : vector<8x8xf32>
    %8 = tpu.matmul %0, %7, %cst_6 {dimension_numbers = #tpu.dot_dimension_numbers<[1], [0], [0], [1], [0, 0, 1, 1], [], []>} : vector<8x16xbf16>, vector<16x8xbf16>, vector<8x8xf32> -> vector<8x8xf32>
    %c0_7 = arith.constant 0 : index
    %c0_8 = arith.constant 0 : index
    %c0_9 = arith.constant 0 : index
    %9 = vector.load %arg4[%c0_7, %c0_8, %c0_9] : memref<4x8x8xf32, #tpu.memory_space<vmem>>, vector<1x8x8xf32>
    %10 = vector.shape_cast %9 : vector<1x8x8xf32> to vector<8x8xf32>
    %11 = vector.shape_cast %8 : vector<8x8xf32> to vector<1x8x8xf32>
    tpu.vector_store %arg4[%c0_7, %c0_8, %c0_9], %11 {strides = array<i32>} : memref<4x8x8xf32, #tpu.memory_space<vmem>>, vector<1x8x8xf32>,
    %c1 = arith.constant 1 : index
    %c0_10 = arith.constant 0 : index
    %c0_11 = arith.constant 0 : index
    %12 = vector.load %arg1[%c1, %c0_10, %c0_11] : memref<4x16x16xi8, #tpu.memory_space<vmem>>, vector<1x16x16xi8>
    %13 = vector.shape_cast %12 : vector<1x16x16xi8> to vector<16x16xi8>
    %14 = arith.uitofp %13 : vector<16x16xi8> to vector<16x16xf32>
    %15 = arith.truncf %14 : vector<16x16xf32> to vector<16x16xbf16>
    %cst_12 = arith.constant dense<0.000000e+00> : vector<16x8xf32>
    %16 = tpu.matmul %15, %1, %cst_12 {dimension_numbers = #tpu.dot_dimension_numbers<[1], [0], [0], [1], [0, 0, 1, 1], [], []>} : vector<16x16xbf16>, vector<16x8xbf16>, vector<16x8xf32> -> vector<16x8xf32>
    %17 = arith.truncf %16 : vector<16x8xf32> to vector<16x8xbf16>
    %cst_13 = arith.constant dense<0.000000e+00> : vector<8x8xf32>
    %18 = tpu.matmul %0, %17, %cst_13 {dimension_numbers = #tpu.dot_dimension_numbers<[1], [0], [0], [1], [0, 0, 1, 1], [], []>} : vector<8x16xbf16>, vector<16x8xbf16>, vector<8x8xf32> -> vector<8x8xf32>
    %c1_14 = arith.constant 1 : index
    %c0_15 = arith.constant 0 : index
    %c0_16 = arith.constant 0 : index
    %19 = vector.load %arg4[%c1_14, %c0_15, %c0_16] : memref<4x8x8xf32, #tpu.memory_space<vmem>>, vector<1x8x8xf32>
    %20 = vector.shape_cast %19 : vector<1x8x8xf32> to vector<8x8xf32>
    %21 = vector.shape_cast %18 : vector<8x8xf32> to vector<1x8x8xf32>
    tpu.vector_store %arg4[%c1_14, %c0_15, %c0_16], %21 {strides = array<i32>} : memref<4x8x8xf32, #tpu.memory_space<vmem>>, vector<1x8x8xf32>,
    %c2 = arith.constant 2 : index
    %c0_17 = arith.constant 0 : index
    %c0_18 = arith.constant 0 : index
    %22 = vector.load %arg1[%c2, %c0_17, %c0_18] : memref<4x16x16xi8, #tpu.memory_space<vmem>>, vector<1x16x16xi8>
    %23 = vector.shape_cast %22 : vector<1x16x16xi8> to vector<16x16xi8>
    %24 = arith.uitofp %23 : vector<16x16xi8> to vector<16x16xf32>
    %25 = arith.truncf %24 : vector<16x16xf32> to vector<16x16xbf16>
    %cst_19 = arith.constant dense<0.000000e+00> : vector<16x8xf32>
    %26 = tpu.matmul %25, %1, %cst_19 {dimension_numbers = #tpu.dot_dimension_numbers<[1], [0], [0], [1], [0, 0, 1, 1], [], []>} : vector<16x16xbf16>, vector<16x8xbf16>, vector<16x8xf32> -> vector<16x8xf32>
    %27 = arith.truncf %26 : vector<16x8xf32> to vector<16x8xbf16>
    %cst_20 = arith.constant dense<0.000000e+00> : vector<8x8xf32>
    %28 = tpu.matmul %0, %27, %cst_20 {dimension_numbers = #tpu.dot_dimension_numbers<[1], [0], [0], [1], [0, 0, 1, 1], [], []>} : vector<8x16xbf16>, vector<16x8xbf16>, vector<8x8xf32> -> vector<8x8xf32>
    %c2_21 = arith.constant 2 : index
    %c0_22 = arith.constant 0 : index
    %c0_23 = arith.constant 0 : index
    %29 = vector.load %arg4[%c2_21, %c0_22, %c0_23] : memref<4x8x8xf32, #tpu.memory_space<vmem>>, vector<1x8x8xf32>
    %30 = vector.shape_cast %29 : vector<1x8x8xf32> to vector<8x8xf32>
    %31 = vector.shape_cast %28 : vector<8x8xf32> to vector<1x8x8xf32>
    tpu.vector_store %arg4[%c2_21, %c0_22, %c0_23], %31 {strides = array<i32>} : memref<4x8x8xf32, #tpu.memory_space<vmem>>, vector<1x8x8xf32>,
    %c3 = arith.constant 3 : index
    %c0_24 = arith.constant 0 : index
    %c0_25 = arith.constant 0 : index
    %32 = vector.load %arg1[%c3, %c0_24, %c0_25] : memref<4x16x16xi8, #tpu.memory_space<vmem>>, vector<1x16x16xi8>
    %33 = vector.shape_cast %32 : vector<1x16x16xi8> to vector<16x16xi8>
    %34 = arith.uitofp %33 : vector<16x16xi8> to vector<16x16xf32>
    %35 = arith.truncf %34 : vector<16x16xf32> to vector<16x16xbf16>
    %cst_26 = arith.constant dense<0.000000e+00> : vector<16x8xf32>
    %36 = tpu.matmul %35, %1, %cst_26 {dimension_numbers = #tpu.dot_dimension_numbers<[1], [0], [0], [1], [0, 0, 1, 1], [], []>} : vector<16x16xbf16>, vector<16x8xbf16>, vector<16x8xf32> -> vector<16x8xf32>
    %37 = arith.truncf %36 : vector<16x8xf32> to vector<16x8xbf16>
    %cst_27 = arith.constant dense<0.000000e+00> : vector<8x8xf32>
    %38 = tpu.matmul %0, %37, %cst_27 {dimension_numbers = #tpu.dot_dimension_numbers<[1], [0], [0], [1], [0, 0, 1, 1], [], []>} : vector<8x16xbf16>, vector<16x8xbf16>, vector<8x8xf32> -> vector<8x8xf32>
    %c3_28 = arith.constant 3 : index
    %c0_29 = arith.constant 0 : index
    %c0_30 = arith.constant 0 : index
    %39 = vector.load %arg4[%c3_28, %c0_29, %c0_30] : memref<4x8x8xf32, #tpu.memory_space<vmem>>, vector<1x8x8xf32>
    %40 = vector.shape_cast %39 : vector<1x8x8xf32> to vector<8x8xf32>
    %41 = vector.shape_cast %38 : vector<8x8xf32> to vector<1x8x8xf32>
    tpu.vector_store %arg4[%c3_28, %c0_29, %c0_30], %41 {strides = array<i32>} : memref<4x8x8xf32, #tpu.memory_space<vmem>>, vector<1x8x8xf32>,
    return
  }
  func.func @transform_0(%arg0: i32) -> (i32, i32, i32) {
    %c0_i32 = arith.constant 0 : i32
    %c0_i32_0 = arith.constant 0 : i32
    %c0_i32_1 = arith.constant 0 : i32
    return %arg0, %c0_i32, %c0_i32_0 : i32, i32, i32
  }
  func.func @transform_1(%arg0: i32) -> (i32, i32) {
    %c0_i32 = arith.constant 0 : i32
    %c0_i32_0 = arith.constant 0 : i32
    %c0_i32_1 = arith.constant 0 : i32
    return %c0_i32, %c0_i32_0 : i32, i32
  }
  func.func @transform_2(%arg0: i32) -> (i32, i32) {
    %c0_i32 = arith.constant 0 : i32
    %c0_i32_0 = arith.constant 0 : i32
    %c0_i32_1 = arith.constant 0 : i32
    return %c0_i32, %c0_i32_0 : i32, i32
  }
  func.func @transform_3(%arg0: i32) -> (i32, i32, i32) {
    %c0_i32 = arith.constant 0 : i32
    %c0_i32_0 = arith.constant 0 : i32
    %c0_i32_1 = arith.constant 0 : i32
    return %arg0, %c0_i32, %c0_i32_0 : i32, i32, i32
  }
}

</mosaic_0001>

<bundles_post_ra>
// kernel: resize_center_crop.1
= control target key start
LH: loop header
LB: loop body
LE: loop exit
PB: predicated region body
PF: predicated region fallthrough
CT: control target
= control target key end

     0   :  { %s1002_s0 = inlined_call_operand.hbm [shape: u8[8,16,16], index: 0, kind: input, shape index: {}]   ;;  %s1003_s1 = inlined_call_operand.hbm [shape: bf16[8,16], index: 1, kind: input, shape index: {}]   ;;  %s1004_s2 = inlined_call_operand.hbm [shape: bf16[16,8], index: 2, kind: input, shape index: {}]   ;;  %s1005_s3 = inlined_call_operand.hbm [shape: f32[8,8,8], index: 3, kind: output, shape index: {}]  }
   0x1   :  { %1006 = sst [smem:[#allocation12_spill]] %s1003_s1 }
   0x2   :  { %8 = vsyncpa [#allocation3], 0 }
   0x3   :  { %10 = vsyncpa [#allocation3 + $0x1], 0 }
   0x4   :  { %11 = vsyncpa [#allocation6], 0 }
   0x5   :  { %12 = vsyncpa [#allocation4], 0 }
   0x6   :  { %14 = vsyncpa [#allocation4 + $0x1], 0  ;;  %s844_s12 = smov 0   ;;  %s846_s13 = smov 0  }
   0x7   :  { %s848_s14 = smov 0   ;;  %s850_s15 = smov 0  }
   0x8 LB: > { %s865_s16 = sadd.s32 4294967295, %s814_s15   ;;  %s518_s17 = sadd.s32 4294967294, %s814_s15   ;;  %s814_s15 = sphi %s850_s15, %s1018_s15   ;;  %s810_s14 = sphi %s848_s14, %s1017_s14   ;;  %s806_s13 = sphi %s846_s13, %s1016_s13   ;;  %s802_s12 = sphi %s844_s12, %s1015_s12  }
   0x9   : > { %s869_s18 = sadd.s32 1, %s814_s15   ;;  %s27_s19 = sadd.s32 1, %s810_s14 }
   0xa   : > { %s24_s20 = ssub.s32 %s814_s15, %s869_s18  ;;  %p34_p0 = scmp.ne.s32.totalorder %s810_s14, %s806_s13 }
   0xb   : > { %p25_p1 = scmp.eq.s32.totalorder %s24_s20, 0  ;;  %p35_p2 = scmp.eq.s32.totalorder %s814_s15, 0 }
   0xc   : > { %p40_p3 = scmp.ne.s32.totalorder %s806_s13, %s802_s12  ;;  %p41_p4 = scmp.eq.s32.totalorder %s865_s16, 0 }
   0xd   : > { %s881_s21 = scalar_select %p25_p1, %s810_s14, %s27_s19  }
   0xe   : > { %p883_p5 = por %p35_p2, %p34_p0  ;;  %p889_p6 = por %p41_p4, %p40_p3 }
   0xf   : > { %p106_p7 = scmp.eq.s32.totalorder %s865_s16, 1  ;;  %p112_p8 = scmp.eq.s32.totalorder %s518_s17, 1 }
  0x10   : > { %p519_p9 = scmp.ge.s32.totalorder %s814_s15, 1  ;;  %p119_p10 = scmp.lt.s32.totalorder %s814_s15, 3 }
  0x11   : > { %p896_p11 = por %p106_p7, %p34_p0  ;;  %p900_p12 = por %p112_p8, %p40_p3 }
  0x12   : > { %p904_p13 = pnand %p519_p9, %p119_p10  ;;  %s1012_s1 = sld [smem:[#allocation12_spill]] }
  0x13   : > { %s816_s30 = smov [#allocation5]   ;;  %p610_p3 = scmp.lt.s32.totalorder %s814_s15, 2 }
  0x14   : > { %p593_p1 = pneg %p904_p13  ;;  %s133_s4 = sshll.u32 %s816_s30, 4  ;;  %s134_s4 = int_to_ptr.vmem [resolvable:$true] %s133_s4 }
  0x15   : > { %s142_s7 = sshll.u32 %s1004_s2, 4  ;;  %p922_p7 = pnand %p610_p3, %p883_p5  ;;  %s143_s7 = int_to_ptr.hbm [resolvable:$true] %s142_s7 }
  0x16   : > { %p594_p2 = pnand %p593_p1, %p41_p4  ;;  %s817_s9 = smov [#allocation7]  }
  0x17   : > { %s144_s10 = sshll.u32 %s817_s9, 4  ;;  %s158_s11 = sand.u32 1, %s810_s14   ;;  %s145_s10 = int_to_ptr.vmem [resolvable:$true] %s144_s10 }
  0x18   : > { %s131_s29 = sshll.u32 %s1012_s1, 4  ;;  %s818_s17 = smov 64   ;;  %s132_s29 = int_to_ptr.hbm [resolvable:$true] %s131_s29 }
  0x19   : > { %596 = dma.hbm_to_vmem [thread:$0]  (!%p594_p2), %s132_s29, 64, %s134_s4, [#allocation6]  }
  0x1a   : > { %s819_s19 = smov 4   ;;  %s523_s20 = sshll.u32 %s158_s11, 4 }
  0x1b   : > { %599 = dma.hbm_to_vmem [thread:$0]  (!%p594_p2), %s143_s7, 128, %s145_s10, [#allocation6], %s818_s17, %s818_s17, %s819_s19  }
  0x1c   : > { %s559_s27 = sshll.u32 %s814_s15, 4  ;;  %s162_s29 = scalar_lea.vmem [#allocation2], %s523_s20 }
  0x1d   : > { %s168_s5 = scalar_lea.hbm %s1002_s0, %s559_s27  ;;  %s171_s22 = sshll.u32 %s162_s29, 4  ;;  %s172_s22 = int_to_ptr.vmem [resolvable:$true] %s171_s22 }
  0x1e   : > { %s169_s4 = sshll.u32 %s168_s5, 4  ;;  %s159_s6 = scalar_lea.sflag [#allocation3], %s158_s11  ;;  %s170_s4 = int_to_ptr.hbm [resolvable:$true] %s169_s4 }
  0x1f   : > { %s714_s1 = sshra.s32 %s170_s4, 4  ;;  %p718_p8 = pneg %p922_p7  ;;  %s715_s1 = int_to_ptr.hbm [resolvable:$true] %s714_s1 }
  0x20   : > { %s716_s9 = scalar_lea.hbm %s715_s1, 16  ;;  %s721_s17 = scalar_lea.hbm %s1002_s0, 32 }
  0x21   : > { %p717_p5 = scmp.ne.s32.totalorder %s715_s1, %s716_s9  ;;  %p722_p1 = scmp.lt.s32.totalorder %s715_s1, %s1002_s0 }
  0x22   : > { %p723_p2 = scmp.lt.s32.totalorder %s721_s17, %s716_s9 }
  0x23   : > { %p719_p9 = pnand %p718_p8, %p717_p5 }
  0x24   : > { %p724_p3 = por %p723_p2, %p722_p1 }
  0x25   : > { %p720_p10 = pneg %p719_p9 }
  0x27   : > { %p725_p0 = pnand %p724_p3, %p720_p10 }
  0x29   : > { %728 = shalt.err (!%p725_p0)
}
  0x2a   : > { %s820_s11 = smov 32   ;;  %s821_s20 = smov 2  }
  0x2b   : > { %603 = dma.hbm_to_vmem [thread:$0]  (!%p922_p7), %s170_s4, 256, %s172_s22, %s159_s6, %s820_s11, %s820_s11, %s821_s20  }
  0x2c   : > { %183 = sbr.rel (%p904_p13) target bundleno = 363 (0x16b), region = 32  ;;  %s944_s28 = sand.u32 (!%p904_p13), 1, %s806_s13  }
  0x2d   : > { %s528_s30 = sshll.u32 (!%p904_p13), %s944_s28, 4  ;;  %s186_s1 = scalar_lea.sflag (!%p904_p13), [#allocation3], %s944_s28 }
  0x2e   : > { %s189_s5 = scalar_lea.vmem (!%p904_p13), [#allocation2], %s528_s30 }
  0x31   : > { %789 = dma.done.wait (%p889_p6), %s186_s1, 256  }
  0x32   : > { %791 = vsyncadd (%p889_p6), %s186_s1, 4294967040 }
  0x33   : > { %793 = dma.done.wait (%p41_p4), [#allocation6], 192  }
  0x34   : > { %795 = vsyncadd (%p41_p4), [#allocation6], 4294967104  ;;  %v560_v0 = vld [vmem:[#allocation7] sm:$0xff]  ;;  %v563_v2 = vld [vmem:[%s189_s5] sm:$0xf]   ;;  %vm244_vm0 = vcmask 130048  }
  0x35   : > { %v578_v1 = vld [vmem:[%s189_s5 + $0x4] sm:$0xff]   ;;  %v564_v5 = vunpack.c.0.s8 %v563_v2  ;;  %v565_v6 = vunpack.c.1.s8 %v563_v2  ;;  %301 = vmatpush.bf16.msra.mxu2 %v560_v0  ;;  %255 = vmatpush.bf16.msra.mxu0 %v560_v0  ;;  %v580_v15 = vld [vmem:[%s189_s5 + $0xc] sm:$0xf]   ;;  %v226_v36 = vld [vmem:[#allocation5] sm:$0xf]  ;;  %s531_s23 = sshll.u32 %s944_s28, 5 }
  0x36   : > { %v568_v3 = vunpack.c.0.s8 %v578_v1  ;;  %v569_v4 = vunpack.c.1.s8 %v578_v1  ;;  %v576_v18 = vunpack.c.0.s8 %v580_v15  ;;  %v577_v19 = vunpack.c.1.s8 %v580_v15  ;;  %s222_s26 = scalar_lea.vmem [#allocation8], %s531_s23  ;;  %s561_s8 = sshll.u32 %s865_s16, 5 }
  0x37   : > { %v233_v9 = vand.u32 255, %v564_v5  ;;  %v234_v10 = vand.u32 255, %v565_v6  ;;  %v572_v20 = vunpack.c.2.s8 %v578_v1  ;;  %v573_v21 = vunpack.c.3.s8 %v578_v1  ;;  %s422_s4 = scalar_lea.hbm %s1005_s3, %s561_s8  ;;  %s423_s6 = sshll.u32 %s222_s26, 4  ;;  %s424_s6 = int_to_ptr.vmem [resolvable:$true] %s423_s6 }
  0x38   : > { %v286_v7 = vand.u32 255, %v568_v3  ;;  %v287_v8 = vand.u32 255, %v569_v4  ;;  %v372_v22 = vand.u32 255, %v576_v18  ;;  %v373_v23 = vand.u32 255, %v577_v19  ;;  %s425_s9 = sshll.u32 %s422_s4, 4  ;;  %s411_s7 = scalar_lea.sflag [#allocation4], %s944_s28  ;;  %s426_s9 = int_to_ptr.hbm [resolvable:$true] %s425_s9 }
  0x39   : > { %387 = vmatpush.bf16.msrb.mxu2 %v560_v0  ;;  %344 = vmatpush.bf16.msrb.mxu0 %v560_v0  ;;  %v235_v13 = vcvt.s32.f32 %v233_v9  ;;  %v236_v14 = vcvt.s32.f32 %v234_v10  ;;  %v329_v24 = vand.u32 255, %v572_v20  ;;  %v330_v25 = vand.u32 255, %v573_v21  ;;  %s758_s10 = sshra.s32 %s426_s9, 4  ;;  %s764_s27 = scalar_lea.hbm %s1005_s3, 64  ;;  %s759_s10 = int_to_ptr.hbm [resolvable:$true] %s758_s10 }
  0x3a   : > { %v288_v11 = vcvt.s32.f32 %v286_v7  ;;  %v289_v12 = vcvt.s32.f32 %v287_v8  ;;  %v374_v26 = vcvt.s32.f32 %v372_v22  ;;  %v375_v27 = vcvt.s32.f32 %v373_v23  ;;  %s760_s17 = scalar_lea.hbm %s759_s10, 32  ;;  %p765_p0 = scmp.lt.s32.totalorder %s759_s10, %s1005_s3 }
  0x3b   : > { %v237_v17 = vpack.c.bf16 %v236_v14, %v235_v13  ;;  %v331_v28 = vcvt.s32.f32 %v329_v24  ;;  %v332_v29 = vcvt.s32.f32 %v330_v25  ;;  %vm279_vm1 = vcmask 64512   ;;  %p761_p4 = scmp.ne.s32.totalorder %s759_s10, %s760_s17  ;;  %p766_p7 = scmp.lt.s32.totalorder %s764_s27, %s760_s17 }
  0x3c   : > { %v290_v16 = vpack.c.bf16 %v289_v12, %v288_v11  ;;  %v376_v30 = vpack.c.bf16 %v375_v27, %v374_v26 }
  0x3d   : > { %536 = vmatmul.msk.bf16.vlgmr.msra.gmra.mxu0 %vm244_vm0, %v237_v17  ;;  %v333_v31 = vpack.c.bf16 %v332_v29, %v331_v28  ;;  %p762_p6 = pnand %p761_p4, %p896_p11  ;;  %p767_p5 = por %p766_p7, %p765_p0 }
  0x3e   : > { %540 = vmatmul.msk.bf16.vlgmr.msra.gmra.mxu2 %vm244_vm0, %v290_v16 }
  0x3f   : > { %p763_p13 = pneg %p762_p6 }
  0x41   : > { %p768_p8 = pnand %p767_p5, %p763_p13 }
  0x4d   : > { %545 = vmatmul.msk.bf16.vlgmr.msrb.gmra.mxu0 %vm244_vm0, %v333_v31 }
  0x4e   : > { %550 = vmatmul.msk.bf16.vlgmr.msrb.gmra.mxu2 %vm244_vm0, %v376_v30 }
  0xba   : > { %v257_v32 = vpop.f32.mrf.mxu0 }
  0xc1   : > { %v303_v33 = vpop.f32.mrf.mxu2 }
  0xc2   : > { %v259_v34 = vpop.f32.mrf.mxu0 }
  0xc3   : > { %v262_v35 = vpack.c.bf16 %v259_v34, %v257_v32 }
  0xc5   : > { %273 = vmatpush.bf16.msra.mxu1 %v262_v35 }
  0xc8   : > { %537 = vmatmul.msk.bf16.vlgmr.msra.gmra.mxu1 %vm244_vm0, %v226_v36 }
  0xc9   : > { %v305_v37 = vpop.f32.mrf.mxu2 }
  0xca   : > { %v308_v38 = vpack.c.bf16 %v305_v37, %v303_v33  ;;  %v346_v39 = vpop.f32.mrf.mxu0 }
  0xcc   : > { %316 = vmatpush.bf16.msra.mxu3 %v308_v38 }
  0xcf   : > { %541 = vmatmul.msk.bf16.vlgmr.msra.gmra.mxu3 %vm244_vm0, %v226_v36 }
  0xd1   : > { %v389_v40 = vpop.f32.mrf.mxu2 }
  0xd2   : > { %v348_v41 = vpop.f32.mrf.mxu0 }
  0xd3   : > { %v351_v42 = vpack.c.bf16 %v348_v41, %v346_v39 }
  0xd5   : > { %359 = vmatpush.bf16.msrb.mxu1 %v351_v42 }
  0xd8   : > { %546 = vmatmul.msk.bf16.vlgmr.msrb.gmra.mxu1 %vm244_vm0, %v226_v36 }
  0xd9   : > { %v391_v43 = vpop.f32.mrf.mxu2 }
  0xda   : > { %v394_v44 = vpack.c.bf16 %v391_v43, %v389_v40 }
  0xdc   : > { %402 = vmatpush.bf16.msrb.mxu3 %v394_v44 }
  0xdf   : > { %551 = vmatmul.msk.bf16.vlgmr.msrb.gmra.mxu3 %vm244_vm0, %v226_v36 }
 0x145   : > { %v275_v45 = vpop.f32.mrf.mxu1 }
 0x146   : > { %280 = vst.msk [vmem:[%s222_s26] sm:$0xff] %vm279_vm1, %v275_v45 }
 0x14d   : > { %v277_v46 = vpop.f32.mrf.mxu1 }
 0x152   : > { %v318_v47 = vpop.f32.mrf.mxu3 }
 0x153   : > { %542 = vst.msk [vmem:[%s222_s26 + $0x8] sm:$0xff] %vm279_vm1, %v318_v47 }
 0x155   : > { %v361_v48 = vpop.f32.mrf.mxu1 }
 0x156   : > { %547 = vst.msk [vmem:[%s222_s26 + $0x10] sm:$0xff] %vm279_vm1, %v361_v48 }
 0x15a   : > { %v320_v49 = vpop.f32.mrf.mxu3 }
 0x15d   : > { %v363_v50 = vpop.f32.mrf.mxu1 }
 0x162   : > { %v404_v51 = vpop.f32.mrf.mxu3 }
 0x163   : > { %552 = vst.msk [vmem:[%s222_s26 + $0x18] sm:$0xff] %vm279_vm1, %v404_v51 }
 0x164   : > { %771 = shalt.err (!%p768_p8)
}
 0x165   : > { %s822_s28 = smov 128   ;;  %s823_s30 = smov 8  }
 0x166   : > { %591 = dma.vmem_to_hbm [thread:$0]  (%p896_p11), %s424_s6, 512, %s426_s9, %s411_s7, %s822_s28, %s822_s28, %s823_s30  }
 0x16a   : > { %v406_v52 = vpop.f32.mrf.mxu3 }
 0x16b PF: > { %s440_s1 = sand.u32 1, %s802_s12   ;;  %p1014_p9 = scmp.ge.s32.totalorder %s814_s15, 2 }
 0x16c   : > { %s441_s5 = scalar_lea.sflag [#allocation4], %s440_s1 }
 0x16d   : > { %p605_p10 = pnand %p1014_p9, %p900_p12 }
 0x16f   : > { %p606_p1 = pneg %p605_p10 }
 0x171   : > { %797 = dma.done.wait (%p606_p1), %s441_s5, 512  }
 0x172   : > { %799 = vsyncadd (%p606_p1), %s441_s5, 4294966784  ;;  %p17_p2 = scmp.ge.s32.totalorder %s869_s18, 4   ;;  %s1015_s12 = smov %s806_s13 }
 0x173   : > { %s1016_s13 = smov %s810_s14  ;;  %s1017_s14 = smov %s881_s21 }
 0x174   : > { %s1018_s15 = smov %s869_s18  ;;  %19 = sbr.rel (!%p17_p2) target bundleno = 8 (0x8), region = 91 }
 0x179   :  { %447 = vsyncpa [#allocation3], 1 }
 0x17a   :  { %449 = vsyncpa [#allocation3 + $0x1], 1 }
 0x17b   :  { %450 = vsyncpa [#allocation6], 1 }
 0x17c   :  { %451 = vsyncpa [#allocation4], 1 }
 0x17d   :  { %453 = vsyncpa [#allocation4 + $0x1], 1 }

</bundles_post_ra>
